<compile_context>
chip_gen: v5e
topology: v5e:2x2
jax: 0.10.0
libtpu: 0.0.40
codegen_flags: <defaults>
</compile_context>

<pallas_src>
import jax
import jax.numpy as jnp
from jax.experimental import pallas as pl
from jax.experimental.pallas import tpu as pltpu


def _round_up(x, m):
    return ((x + m - 1) // m) * m


def _choose_tiling(hw, max_ts=256):
    """Pick padded spatial size and sublane tile.

    Returns (hw_pad, S, TS) with hw_pad % 128 == 0, S = hw_pad // 128 and TS dividing S.
    """
    hw_pad = _round_up(hw, 128)
    s = hw_pad // 128
    if s <= max_ts:
        return hw_pad, s, s  # single spatial tile; block dim == full dim is always legal
    # Larger images: pad so S is a multiple of 8, then take the largest multiple-of-8
    # divisor of S that is <= max_ts (8 always qualifies).
    hw_pad = _round_up(hw, 8 * 128)
    s = hw_pad // 128
    ts = 8
    for cand in range(8, max_ts + 1, 8):
        if s % cand == 0:
            ts = cand
    return hw_pad, s, ts


def _make_kernel(alpha: float):
    def kernel(pred_ref, label_ref, mats_ref, out_ref, acc_ref):
        t = pl.program_id(1)

        @pl.when(t == 0)
        def _():
            acc_ref[...] = jnp.zeros_like(acc_ref)

        # (1, C, TS, 128) abs difference in f32 (inputs may arrive bf16).
        d = jnp.abs(pred_ref[...].astype(jnp.float32)
                    - label_ref[...].astype(jnp.float32))
        # (1, M, TS, 128) -> (1, 1, TS, 128): fused weight
        #   w = alpha + (1 - alpha) * sum_i |mat_i|
        # (sum over the leading M axis is pure VPU adds, no cross-lane work).
        m_abs_sum = jnp.sum(jnp.abs(mats_ref[...].astype(jnp.float32)),
                            axis=1, keepdims=True)
        w = alpha + (1.0 - alpha) * m_abs_sum

        # Elementwise accumulate; cross-lane reduction deferred to the last step.
        acc_ref[...] += d * w

        @pl.when(t == pl.num_programs(1) - 1)
        def _():
            ch_sum = jnp.sum(acc_ref[...], axis=1)                 # (1, TS, 128) VPU adds
            out_ref[...] = jnp.sum(ch_sum, axis=1, keepdims=True)  # (1, 1, 128)

    return kernel


def compositional_loss(pred, label, mats, alpha):
    """pred, label: (B, C, H, W); mats: (B, M, H, W). Returns scalar float32 loss."""
    B, C, H, W = pred.shape
    _, M, _, _ = mats.shape
    hw = H * W
    hw_pad, S, TS = _choose_tiling(hw)

    def prep(x, ch):
        x = x.reshape(B, ch, hw)
        if hw_pad != hw:
            # Zero padding contributes |0 - 0| * w = 0 to the sum -> result unchanged.
            x = jnp.pad(x, ((0, 0), (0, 0), (0, hw_pad - hw)))
        return x.reshape(B, ch, S, 128)

    pred_f = prep(pred, C)
    label_f = prep(label, C)
    mats_f = prep(mats, M)

    # VMEM budget: double-buffered input blocks + f32 accumulator with generous headroom,
    # clamped to a value that is safe on v5e/v6e (128 MiB physical) and v7x (64 MiB).
    itemsize = jnp.dtype(pred.dtype).itemsize
    working = 2 * (2 * C + M) * TS * 128 * itemsize + C * TS * 128 * 4
    vmem_limit = int(min(max(4 * working, 16 * 1024 * 1024), 32 * 1024 * 1024))

    partials = pl.pallas_call(
        _make_kernel(float(alpha)),
        out_shape=jax.ShapeDtypeStruct((B, 1, 128), jnp.float32),
        grid_spec=pltpu.PrefetchScalarGridSpec(
            num_scalar_prefetch=0,
            grid=(B, S // TS),
            in_specs=[
                pl.BlockSpec((1, C, TS, 128), lambda b, t: (b, 0, t, 0)),
                pl.BlockSpec((1, C, TS, 128), lambda b, t: (b, 0, t, 0)),
                pl.BlockSpec((1, M, TS, 128), lambda b, t: (b, 0, t, 0)),
            ],
            out_specs=pl.BlockSpec((1, 1, 128), lambda b, t: (b, 0, 0)),
            scratch_shapes=[
                pltpu.VMEM((1, C, TS, 128), jnp.float32),  # weighted |d| accumulator
            ],
        ),
        compiler_params=pltpu.CompilerParams(
            dimension_semantics=("parallel", "arbitrary"),
            vmem_limit_bytes=vmem_limit,
        ),
    )(pred_f, label_f, mats_f)

    n_elems = float(B * C * hw)   # L1Loss mean denominator (identical for every mask)
    return jnp.sum(partials) / n_elems


def _reference(pred, label, mats, alpha):
    d = jnp.abs(pred - label)
    loss_global = jnp.mean(d)
    loss_local = 0.0
    for i in range(mats.shape[1]):
        mat = mats[:, i:i + 1, :, :]
        loss_local = loss_local + jnp.mean(jnp.abs(pred * mat - label * mat))
    return alpha * loss_global + (1.0 - alpha) * loss_local


if __name__ == "__main__":
    key = jax.random.PRNGKey(0)
    k1, k2, k3 = jax.random.split(key, 3)

    B, C, H, W = 2, 4, 16, 16
    M = 3
    alpha = 0.7

    pred = jax.random.normal(k1, (B, C, H, W), dtype=jnp.float32)
    label = jax.random.normal(k2, (B, C, H, W), dtype=jnp.float32)
    # masks in [0, 1] like soft segmentation maps
    mats = jax.random.uniform(k3, (B, M, H, W), dtype=jnp.float32)

    loss = compositional_loss(pred, label, mats, alpha)
    loss = jax.block_until_ready(loss)

    ref = _reference(pred, label, mats, alpha)
    assert jnp.allclose(loss, ref, rtol=1e-5, atol=1e-6), (loss, ref)

    print("KERNEL_OK")
</pallas_src>

<mosaic_0001>
module attributes {stable_mosaic.version = 11 : i64} {
  func.func @kernel(%arg0: i32, %arg1: i32, %arg2: memref<1x4x2x128xf32, #tpu.memory_space<vmem>>, %arg3: memref<1x4x2x128xf32, #tpu.memory_space<vmem>>, %arg4: memref<1x3x2x128xf32, #tpu.memory_space<vmem>>, %arg5: memref<1x1x128xf32, #tpu.memory_space<vmem>>, %arg6: memref<1x4x2x128xf32, #tpu.memory_space<vmem>>) attributes {dimension_semantics = [#tpu.dimension_semantics<parallel>, #tpu.dimension_semantics<arbitrary>], iteration_bounds = array<i64: 2, 1>, scalar_prefetch = 0 : i64, scratch_operands = 1 : i64, tpu.core_type = #tpu.core_type<tc>, window_params = [{transform_indices = @transform_0, window_bounds = array<i64: 1, 4, 2, 128>}, {transform_indices = @transform_1, window_bounds = array<i64: 1, 4, 2, 128>}, {transform_indices = @transform_2, window_bounds = array<i64: 1, 3, 2, 128>}, {transform_indices = @transform_3, window_bounds = array<i64: 1, 1, 128>}]} {
    %c0_i32 = arith.constant 0 : i32
    %0 = arith.cmpi eq, %arg1, %c0_i32 : i32
    %1 = arith.extui %0 : i1 to i32
    %c0_i32_0 = arith.constant 0 : i32
    %2 = arith.cmpi ne, %1, %c0_i32_0 : i32
    scf.if %2 {
      %cst_24 = arith.constant 0.000000e+00 : f32
      %23 = vector.broadcast %cst_24 : f32 to vector<1x4x2x128xf32>
      %c0_25 = arith.constant 0 : index
      %c0_26 = arith.constant 0 : index
      %c0_27 = arith.constant 0 : index
      %c0_28 = arith.constant 0 : index
      %24 = vector.load %arg6[%c0_25, %c0_26, %c0_27, %c0_28] : memref<1x4x2x128xf32, #tpu.memory_space<vmem>>, vector<1x4x2x128xf32>
      tpu.vector_store %arg6[%c0_25, %c0_26, %c0_27, %c0_28], %23 {strides = array<i32>} : memref<1x4x2x128xf32, #tpu.memory_space<vmem>>, vector<1x4x2x128xf32>,
    } else {
    }
    %c0 = arith.constant 0 : index
    %c0_1 = arith.constant 0 : index
    %c0_2 = arith.constant 0 : index
    %c0_3 = arith.constant 0 : index
    %3 = vector.load %arg2[%c0, %c0_1, %c0_2, %c0_3] : memref<1x4x2x128xf32, #tpu.memory_space<vmem>>, vector<1x4x2x128xf32>
    %c0_4 = arith.constant 0 : index
    %c0_5 = arith.constant 0 : index
    %c0_6 = arith.constant 0 : index
    %c0_7 = arith.constant 0 : index
    %4 = vector.load %arg3[%c0_4, %c0_5, %c0_6, %c0_7] : memref<1x4x2x128xf32, #tpu.memory_space<vmem>>, vector<1x4x2x128xf32>
    %5 = arith.subf %3, %4 : vector<1x4x2x128xf32>
    %6 = math.absf %5 : vector<1x4x2x128xf32>
    %c0_8 = arith.constant 0 : index
    %c0_9 = arith.constant 0 : index
    %c0_10 = arith.constant 0 : index
    %c0_11 = arith.constant 0 : index
    %7 = vector.load %arg4[%c0_8, %c0_9, %c0_10, %c0_11] : memref<1x3x2x128xf32, #tpu.memory_space<vmem>>, vector<1x3x2x128xf32>
    %8 = math.absf %7 : vector<1x3x2x128xf32>
    %cst = arith.constant dense<0.000000e+00> : vector<1x2x128xf32>
    %9 = vector.multi_reduction <add>, %8, %cst [1] : vector<1x3x2x128xf32> to vector<1x2x128xf32>
    %10 = vector.shape_cast %9 : vector<1x2x128xf32> to vector<1x1x2x128xf32>
    %cst_12 = arith.constant 3.000000e-01 : f32
    %11 = vector.broadcast %cst_12 : f32 to vector<1x1x2x128xf32>
    %12 = arith.mulf %11, %10 : vector<1x1x2x128xf32>
    %cst_13 = arith.constant 0.699999988 : f32
    %13 = vector.broadcast %cst_13 : f32 to vector<1x1x2x128xf32>
    %14 = arith.addf %13, %12 : vector<1x1x2x128xf32>
    %c0_14 = arith.constant 0 : index
    %c0_15 = arith.constant 0 : index
    %c0_16 = arith.constant 0 : index
    %c0_17 = arith.constant 0 : index
    %15 = vector.load %arg6[%c0_14, %c0_15, %c0_16, %c0_17] : memref<1x4x2x128xf32, #tpu.memory_space<vmem>>, vector<1x4x2x128xf32>
    %16 = vector.broadcast %14 : vector<1x1x2x128xf32> to vector<1x4x2x128xf32>
    %17 = arith.mulf %6, %16 : vector<1x4x2x128xf32>
    %18 = arith.addf %15, %17 : vector<1x4x2x128xf32>
    %c0_18 = arith.constant 0 : index
    %c0_19 = arith.constant 0 : index
    %c0_20 = arith.constant 0 : index
    %c0_21 = arith.constant 0 : index
    %19 = vector.load %arg6[%c0_18, %c0_19, %c0_20, %c0_21] : memref<1x4x2x128xf32, #tpu.memory_space<vmem>>, vector<1x4x2x128xf32>
    tpu.vector_store %arg6[%c0_18, %c0_19, %c0_20, %c0_21], %18 {strides = array<i32>} : memref<1x4x2x128xf32, #tpu.memory_space<vmem>>, vector<1x4x2x128xf32>,
    %c0_i32_22 = arith.constant 0 : i32
    %20 = arith.cmpi eq, %arg1, %c0_i32_22 : i32
    %21 = arith.extui %20 : i1 to i32
    %c0_i32_23 = arith.constant 0 : i32
    %22 = arith.cmpi ne, %21, %c0_i32_23 : i32
    scf.if %22 {
      %c0_24 = arith.constant 0 : index
      %c0_25 = arith.constant 0 : index
      %c0_26 = arith.constant 0 : index
      %c0_27 = arith.constant 0 : index
      %23 = vector.load %arg6[%c0_24, %c0_25, %c0_26, %c0_27] : memref<1x4x2x128xf32, #tpu.memory_space<vmem>>, vector<1x4x2x128xf32>
      %cst_28 = arith.constant dense<0.000000e+00> : vector<1x2x128xf32>
      %24 = vector.multi_reduction <add>, %23, %cst_28 [1] : vector<1x4x2x128xf32> to vector<1x2x128xf32>
      %cst_29 = arith.constant dense<0.000000e+00> : vector<1x128xf32>
      %25 = vector.multi_reduction <add>, %24, %cst_29 [1] : vector<1x2x128xf32> to vector<1x128xf32>
      %26 = vector.shape_cast %25 : vector<1x128xf32> to vector<1x1x128xf32>
      %c0_30 = arith.constant 0 : index
      %c0_31 = arith.constant 0 : index
      %c0_32 = arith.constant 0 : index
      %27 = vector.load %arg5[%c0_30, %c0_31, %c0_32] : memref<1x1x128xf32, #tpu.memory_space<vmem>>, vector<1x1x128xf32>
      tpu.vector_store %arg5[%c0_30, %c0_31, %c0_32], %26 {strides = array<i32>} : memref<1x1x128xf32, #tpu.memory_space<vmem>>, vector<1x1x128xf32>,
    } else {
    }
    return
  }
  func.func @transform_0(%arg0: i32, %arg1: i32) -> (i32, i32, i32, i32) {
    %c0_i32 = arith.constant 0 : i32
    %c0_i32_0 = arith.constant 0 : i32
    %c0_i32_1 = arith.constant 0 : i32
    return %arg0, %c0_i32, %arg1, %c0_i32_0 : i32, i32, i32, i32
  }
  func.func @transform_1(%arg0: i32, %arg1: i32) -> (i32, i32, i32, i32) {
    %c0_i32 = arith.constant 0 : i32
    %c0_i32_0 = arith.constant 0 : i32
    %c0_i32_1 = arith.constant 0 : i32
    return %arg0, %c0_i32, %arg1, %c0_i32_0 : i32, i32, i32, i32
  }
  func.func @transform_2(%arg0: i32, %arg1: i32) -> (i32, i32, i32, i32) {
    %c0_i32 = arith.constant 0 : i32
    %c0_i32_0 = arith.constant 0 : i32
    %c0_i32_1 = arith.constant 0 : i32
    return %arg0, %c0_i32, %arg1, %c0_i32_0 : i32, i32, i32, i32
  }
  func.func @transform_3(%arg0: i32, %arg1: i32) -> (i32, i32, i32) {
    %c0_i32 = arith.constant 0 : i32
    %c0_i32_0 = arith.constant 0 : i32
    %c0_i32_1 = arith.constant 0 : i32
    return %arg0, %c0_i32, %c0_i32_0 : i32, i32, i32
  }
}

</mosaic_0001>

<bundles_post_ra>
// kernel: tpu_custom_call.1
= control target key start
LH: loop header
LB: loop body
LE: loop exit
PB: predicated region body
PF: predicated region fallthrough
CT: control target
= control target key end

     0   :  { %s981_s0 = inlined_call_operand.hbm [shape: f32[2,4,2,128], index: 0, kind: input, shape index: {}]   ;;  %s982_s1 = inlined_call_operand.hbm [shape: f32[2,4,2,128], index: 1, kind: input, shape index: {}]   ;;  %s983_s2 = inlined_call_operand.hbm [shape: f32[2,3,2,128], index: 2, kind: input, shape index: {}]   ;;  %s984_s3 = inlined_call_operand.hbm [shape: f32[2,1,128], index: 3, kind: output, shape index: {}]  }
   0x1   :  { %993 = sst [smem:[#allocation20_spill]] %s982_s1 }
   0x2   :  { %8 = vsyncpa [#allocation4], 0 }
   0x3   :  { %10 = vsyncpa [#allocation4 + $0x1], 0 }
   0x4   :  { %11 = vsyncpa [#allocation7], 0 }
   0x5   :  { %13 = vsyncpa [#allocation7 + $0x1], 0 }
   0x6   :  { %14 = vsyncpa [#allocation5], 0 }
   0x7   :  { %16 = vsyncpa [#allocation5 + $0x1], 0  ;;  %s801_s12 = smov 0   ;;  %s803_s13 = smov 0  }
   0x8   :  { %s805_s14 = smov 0   ;;  %s807_s15 = smov 0  }
   0x9   :  { %s809_s16 = smov 0   ;;  %s811_s17 = smov 0  }
   0xa LB: > { %994 = sst [smem:[#allocation13_spill]] %s756_s12  ;;  %s832_s18 = sadd.s32 4294967295, %s776_s17   ;;  %s776_s17 = sphi %s811_s17, %s22_s17   ;;  %s772_s16 = sphi %s809_s16, %s1019_s16   ;;  %s768_s15 = sphi %s807_s15, %s1018_s15   ;;  %s764_s14 = sphi %s805_s14, %s1017_s14   ;;  %s760_s13 = sphi %s803_s13, %s1016_s13   ;;  %s756_s12 = sphi %s801_s12, %s1015_s12  }
   0xb   : > { %995 = sst [smem:[#allocation14_spill]] %s764_s14  ;;  %s505_s19 = sadd.s32 4294967294, %s776_s17  }
   0xc   : > { %996 = sst [smem:[#allocation15_spill]] %s776_s17  ;;  %s34_s20 = sadd.s32 1, %s772_s16 }
   0xd   : > { %s43_s21 = sadd.s32 1, %s764_s14  ;;  %p36_p0 = scmp.ge.s32.totalorder %s34_s20, 2 }
   0xe   : > { %p50_p1 = scmp.ne.s32.totalorder %s764_s14, %s760_s13  ;;  %p51_p2 = scmp.eq.s32.totalorder %s776_s17, 0 }
   0xf   : > { %p56_p3 = scmp.ne.s32.totalorder %s760_s13, %s756_s12  ;;  %s1021_s20 = smov (%p36_p0, %s34_s20), 0 }
  0x10   : > { %997 = sst [smem:[#allocation16_spill]] %s1021_s20  ;;  %p844_p4 = por %p51_p2, %p50_p1 }
  0x11   : > { %p57_p5 = scmp.eq.s32.totalorder %s832_s18, 0  ;;  %s38_s23 = ssub.s32 %s772_s16, %s1021_s20 }
  0x12   : > { %p136_p6 = scmp.eq.s32.totalorder %s832_s18, 1  ;;  %p41_p7 = scmp.eq.s32.totalorder %s38_s23, 0 }
  0x13   : > { %p852_p8 = por %p57_p5, %p56_p3  ;;  %p142_p10 = scmp.eq.s32.totalorder %s505_s19, 1 }
  0x14   : > { %p856_p9 = por %p136_p6, %p50_p1  ;;  %p507_p12 = scmp.ge.s32.totalorder %s776_s17, 2 }
  0x15   : > { %s861_s26 = scalar_select %p41_p7, %s764_s14, %s43_s21  }
  0x16   : > { %s1000_s25 = scalar_select %p856_p9, 1, 0 }
  0x17   : > { %1002 = sst [smem:[#allocation18_spill]] %s861_s26  ;;  %p863_p11 = por %p142_p10, %p56_p3 }
  0x18   : > { %1001 = sst [smem:[#allocation17_spill]] %s1000_s25  ;;  %p547_p13 = scmp.lt.s32.totalorder %s776_s17, 2 }
  0x19   : > { %s1003_s27 = scalar_select %p863_p11, 1, 0 }
  0x1a   : > { %s870_s28 = sand.u32 1, %s764_s14   ;;  %s520_s30 = sshll.u32 %s772_s16, 3 }
  0x1b   : > { %1004 = sst [smem:[#allocation19_spill]] %s1003_s27  ;;  %s508_s29 = sshll.u32 %s870_s28, 3 }
  0x1c   : > { %p876_p0 = pnand %p547_p13, %p844_p4  ;;  %s185_s5 = sand.u32 1, %s776_s17  }
  0x1d   : > { %s1006_s1 = sld [smem:[#allocation20_spill]]  ;;  %s189_s10 = scalar_lea.vmem [#allocation6], %s508_s29 }
  0x1e   : > { %s198_s11 = sshll.u32 %s189_s10, 4  ;;  %s186_s19 = scalar_lea.sflag [#allocation7], %s185_s5  ;;  %s199_s11 = int_to_ptr.vmem [resolvable:$true] %s198_s11 }
  0x1f   : > { %s778_s21 = smov 32   ;;  %s779_s22 = smov 2  }
  0x20   : > { %p515_p1 = scmp.ge.s32.totalorder %s776_s17, 1  ;;  %p229_p2 = scmp.lt.s32.totalorder %s776_s17, 3 }
  0x21   : > { %s163_s5 = scalar_lea.sflag [#allocation4], %s870_s28 }
  0x22   : > { %p888_p3 = pnand %p515_p1, %p229_p2 }
  0x23   : > { %s195_s8 = scalar_lea.hbm %s1006_s1, %s520_s30  ;;  %s166_s1 = scalar_lea.vmem [#allocation3], %s508_s29 }
  0x24   : > { %s196_s9 = sshll.u32 %s195_s8, 4  ;;  %s172_s8 = scalar_lea.hbm %s981_s0, %s520_s30  ;;  %s197_s9 = int_to_ptr.hbm [resolvable:$true] %s196_s9 }
  0x25   : > { %539 = dma.hbm_to_vmem [thread:$0]  (!%p876_p0), %s197_s9, 128, %s199_s11, %s186_s19, %s778_s21, %s778_s21, %s779_s22  }
  0x26   : > { %s173_s10 = sshll.u32 %s172_s8, 4  ;;  %s175_s20 = sshll.u32 %s166_s1, 4  ;;  %s174_s10 = int_to_ptr.hbm [resolvable:$true] %s173_s10  ;;  %s176_s20 = int_to_ptr.vmem [resolvable:$true] %s175_s20 }
  0x27   : > { %536 = dma.hbm_to_vmem [thread:$0]  (!%p876_p0), %s174_s10, 128, %s176_s20, %s163_s5, %s778_s21, %s778_s21, %s779_s22  }
  0x28   : > { %s522_s9 = smul.u32 6, %s870_s28  ;;  %s908_s1 = sand.u32 (!%p888_p3), 1, %s760_s13  }
  0x29   : > { %s523_s11 = smul.u32 6, %s772_s16  ;;  %s516_s20 = sshll.u32 (!%p888_p3), %s908_s1, 3 }
  0x2a   : > { %s212_s27 = scalar_lea.vmem [#allocation8], %s522_s9  ;;  %233 = sbr.rel (%p888_p3) target bundleno = 103 (0x67), region = 32 }
  0x2b   : > { %s218_s17 = scalar_lea.hbm %s983_s2, %s523_s11  ;;  %s221_s12 = sshll.u32 %s212_s27, 4  ;;  %s222_s12 = int_to_ptr.vmem [resolvable:$true] %s221_s12 }
  0x2c   : > { %s219_s25 = sshll.u32 %s218_s17, 4  ;;  %s236_s28 = scalar_lea.sflag (!%p888_p3), [#allocation4], %s908_s1  ;;  %s220_s25 = int_to_ptr.hbm [resolvable:$true] %s219_s25 }
  0x2d   : > { %542 = dma.hbm_to_vmem [thread:$0]  (!%p876_p0), %s220_s25, 96, %s222_s12, %s186_s19, %s778_s21, %s778_s21, %s779_s22  }
  0x2e   : > { %s912_s14 = scalar_lea.vmem (!%p888_p3), [#allocation3], %s516_s20 }
  0x2f   : > { %743 = dma.done.wait (%p852_p8), %s236_s28, 128  }
  0x30   : > { %745 = vsyncadd (%p852_p8), %s236_s28, 4294967168  ;;  %s245_s12 = sand.u32 1, %s832_s18   ;;  %s919_s25 = scalar_lea.vmem [#allocation6], %s516_s20 }
  0x31   : > { %s246_s17 = scalar_lea.sflag [#allocation7], %s245_s12 }
  0x32   : > { %747 = dma.done.wait (%p852_p8), %s246_s17, 224  }
  0x33   : > { %749 = vsyncadd (%p852_p8), %s246_s17, 4294967072  ;;  %s524_s26 = smul.u32 6, %s908_s1  ;;  %v780_v0 = vmov 0.0   ;;  %vm322_vm0 = vcmask 1041408   ;;  %v300_v1 = vld [vmem:[%s912_s14] sm:$0x3]  ;;  %s377_s30 = scalar_lea.hbm %s984_s3, %s768_s15 }
  0x34   : > { %296 = vst [vmem:[#allocation2] sm:$0x3] %v780_v0  ;;  %v304_v2 = vld [vmem:[%s919_s25] sm:$0x3]  ;;  %v301_v10 = vld [vmem:[%s912_s14 + $0x2] sm:$0x3] }
  0x35   : > { %297 = vst [vmem:[#allocation2 + $0x2] sm:$0x3] %v780_v0  ;;  %s259_s18 = scalar_lea.vmem [#allocation8], %s524_s26  ;;  %v308_v11 = vsub.f32 %v300_v1, %v304_v2  ;;  %v305_v14 = vld [vmem:[%s919_s25 + $0x2] sm:$0x3]  ;;  %s291_s4 = scalar_lea.vmem [#allocation9], %s908_s1 }
  0x36   : > { %298 = vst [vmem:[#allocation2 + $0x4] sm:$0x3] %v780_v0  ;;  %v316_v3 = vld [vmem:[%s259_s18] sm:$0x3]  ;;  %v317_v4 = vld [vmem:[%s259_s18 + $0x2] sm:$0x3]  ;;  %v309_v16 = vsub.f32 %v301_v10, %v305_v14 }
  0x37   : > { %299 = vst [vmem:[#allocation2 + $0x6] sm:$0x3] %v780_v0  ;;  %v318_v5 = vld [vmem:[%s259_s18 + $0x4] sm:$0x3]  ;;  %v319_v6 = vand.u32 2147483647, %v316_v3 }
  0x38   : > { %v320_v7 = vand.u32 2147483647, %v317_v4  ;;  %v321_v8 = vand.u32 2147483647, %v318_v5  ;;  %v302_v17 = vld [vmem:[%s912_s14 + $0x4] sm:$0x3] }
  0x39   : > { %v323_v9 = vsel %vm322_vm0, %v319_v6, 0.0  ;;  %v306_v18 = vld [vmem:[%s919_s25 + $0x4] sm:$0x3]  ;;  %v303_v20 = vld [vmem:[%s912_s14 + $0x6] sm:$0x3]  ;;  %s379_s19 = sshll.u32 %s291_s4, 4  ;;  %s380_s19 = int_to_ptr.vmem [resolvable:$true] %s379_s19 }
  0x3a   : > { %v324_v12 = vsel %vm322_vm0, %v320_v7, 0.0  ;;  %v326_v13 = vsel %vm322_vm0, %v321_v8, 0.0  ;;  %v310_v19 = vsub.f32 %v302_v17, %v306_v18  ;;  %v307_v21 = vld [vmem:[%s919_s25 + $0x6] sm:$0x3]  ;;  %v312_v24 = vand.u32 2147483647, %v308_v11 }
  0x3b   : > { %v325_v15 = vadd.f32 %v324_v12, %v323_v9  ;;  %v311_v23 = vsub.f32 %v303_v20, %v307_v21  ;;  %v313_v25 = vand.u32 2147483647, %v309_v16  ;;  %v330_v30 = vld [vmem:[#allocation2] sm:$0x3]  ;;  %s381_s21 = sshll.u32 %s377_s30, 4  ;;  %s369_s22 = scalar_lea.sflag [#allocation5], %s908_s1  ;;  %s382_s21 = int_to_ptr.hbm [resolvable:$true] %s381_s21 }
  0x3c   : > { %v314_v27 = vand.u32 2147483647, %v310_v19  ;;  %v331_v31 = vld [vmem:[#allocation2 + $0x2] sm:$0x3]  ;;  %s704_s23 = sshra.s32 %s382_s21, 4  ;;  %s710_s15 = scalar_lea.hbm %s984_s3, 2  ;;  %s705_s23 = int_to_ptr.hbm [resolvable:$true] %s704_s23 }
  0x3d   : > { %v327_v22 = vadd.f32 %v326_v13, %v325_v15  ;;  %v315_v28 = vand.u32 2147483647, %v311_v23  ;;  %v332_v32 = vld [vmem:[#allocation2 + $0x4] sm:$0x3]  ;;  %s706_s6 = scalar_lea.hbm %s705_s23, 1  ;;  %p711_p7 = scmp.lt.s32.totalorder %s705_s23, %s984_s3 }
  0x3e   : > { %v333_v36 = vld [vmem:[#allocation2 + $0x6] sm:$0x3]  ;;  %p707_p4 = scmp.ne.s32.totalorder %s705_s23, %s706_s6  ;;  %p712_p8 = scmp.lt.s32.totalorder %s710_s15, %s706_s6 }
  0x3f   : > { %v328_v26 = vmul.f32 0.3, %v327_v22 }
  0x40   : > { %p708_p5 = pnand %p707_p4, %p856_p9  ;;  %p713_p10 = por %p712_p8, %p711_p7 }
  0x41   : > { %v329_v29 = vadd.f32 0.7, %v328_v26 }
  0x42   : > { %p709_p6 = pneg %p708_p5 }
  0x43   : > { %v334_v33 = vmul.f32 %v329_v29, %v312_v24  ;;  %v335_v34 = vmul.f32 %v329_v29, %v313_v25  ;;  %v336_v35 = vmul.f32 %v329_v29, %v314_v27  ;;  %v337_v37 = vmul.f32 %v329_v29, %v315_v28 }
  0x44   : > { %p714_p13 = pnand %p713_p10, %p709_p6 }
  0x45   : > { %v338_v38 = vadd.f32 %v334_v33, %v330_v30  ;;  %v339_v39 = vadd.f32 %v335_v34, %v331_v31  ;;  %v340_v40 = vadd.f32 %v336_v35, %v332_v32  ;;  %v341_v41 = vadd.f32 %v337_v37, %v333_v36 }
  0x47   : > { %342 = vst [vmem:[#allocation2] sm:$0x3] %v338_v38 }
  0x48   : > { %343 = vst [vmem:[#allocation2 + $0x2] sm:$0x3] %v339_v39 }
  0x49   : > { %344 = vst [vmem:[#allocation2 + $0x4] sm:$0x3] %v340_v40 }
  0x4a   : > { %345 = vst [vmem:[#allocation2 + $0x6] sm:$0x3] %v341_v41 }
  0x4e   : > { %v349_v42 = vld [vmem:[#allocation2] sm:$0x3] }
  0x4f   : > { %v350_v43 = vld [vmem:[#allocation2 + $0x2] sm:$0x3]  ;;  %v353_v44 = vsel %vm322_vm0, %v349_v42, 0.0 }
  0x50   : > { %v351_v45 = vld [vmem:[#allocation2 + $0x4] sm:$0x3]  ;;  %v354_v46 = vsel %vm322_vm0, %v350_v43, 0.0 }
  0x51   : > { %v352_v47 = vld [vmem:[#allocation2 + $0x6] sm:$0x3]  ;;  %v355_v48 = vadd.f32 %v354_v46, %v353_v44  ;;  %v356_v49 = vsel %vm322_vm0, %v351_v45, 0.0 }
  0x52   : > { %v358_v50 = vsel %vm322_vm0, %v352_v47, 0.0 }
  0x53   : > { %v357_v51 = vadd.f32 %v356_v49, %v355_v48 }
  0x55   : > { %v359_v52 = vadd.f32 %v358_v50, %v357_v51 }
  0x57   : > { %v360_v53 = vsel %vm322_vm0, %v359_v52, 0.0 }
  0x58   : > { %v361_v54 = vrot.slane %v360_v53, 4 }
  0x5a   : > { %v362_v55 = vadd.f32 %v361_v54, %v360_v53 }
  0x5c   : > { %v363_v56 = vrot.slane %v362_v55, 2 }
  0x5e   : > { %v364_v57 = vadd.f32 %v363_v56, %v362_v55 }
  0x60   : > { %v365_v58 = vrot.slane %v364_v57, 1 }
  0x62   : > { %v366_v59 = vadd.f32 %v365_v58, %v364_v57 }
  0x64   : > { %367 = vst [vmem:[%s291_s4] sm:$0x1] %v366_v59 }
  0x65   : > { %717 = shalt.err (!%p714_p13)
}
  0x66   : > { %531 = dma.vmem_to_hbm [thread:$0]  (%p856_p9), %s380_s19, 16, %s382_s21, %s369_s22  }
  0x67 PF: > { %s1009_s9 = sld [smem:[#allocation13_spill]]  ;;  %p544_p0 = pnand %p507_p12, %p863_p11 }
  0x68   : > { %s1011_s1 = sld [smem:[#allocation15_spill]] }
  0x69   : > { %p545_p1 = pneg %p544_p0 }
  0x6d   : > { %s393_s20 = sand.u32 1, %s1009_s9  }
  0x6e   : > { %s394_s28 = scalar_lea.sflag [#allocation5], %s393_s20 }
  0x6f   : > { %751 = dma.done.wait (%p545_p1), %s394_s28, 16  }
  0x70   : > { %753 = vsyncadd (%p545_p1), %s394_s28, 4294967280  ;;  %s22_s17 = sadd.s32 1, %s1011_s1   ;;  %s1012_s14 = sld [smem:[#allocation14_spill]] }
  0x71   : > { %p19_p2 = scmp.ge.s32.totalorder %s22_s17, 4   ;;  %s1013_s25 = sld [smem:[#allocation18_spill]] }
  0x72   : > { %s1014_s26 = sld [smem:[#allocation16_spill]]  ;;  %s1015_s12 = smov %s760_s13 }
  0x73   : > { %s1018_s15 = smov %s772_s16 }
  0x74   :  { %21 = sbr.rel (!%p19_p2) target bundleno = 10 (0xa), region = 109 }
  0x76   : > { %s1016_s13 = smov %s1012_s14 }
  0x77   : > { %s1017_s14 = smov %s1013_s25 }
  0x78   : > { %s1019_s16 = smov %s1014_s26 }
  0x79   :  { %399 = vsyncpa [#allocation4], 1 }
  0x7a   :  { %401 = vsyncpa [#allocation4 + $0x1], 1 }
  0x7b   :  { %402 = vsyncpa [#allocation7], 1 }
  0x7c   :  { %404 = vsyncpa [#allocation7 + $0x1], 1 }
  0x7d   :  { %405 = vsyncpa [#allocation5], 1 }
  0x7e   :  { %407 = vsyncpa [#allocation5 + $0x1], 1 }

</bundles_post_ra>
